<compile_context>
chip_gen: v6e
topology: v6e:2x2x1
jax: 0.10.0
libtpu: 0.0.40
codegen_flags: <defaults>
</compile_context>

<pallas_src>
import functools

import numpy as np
import jax
import jax.numpy as jnp
from jax import lax
from jax.experimental import pallas as pl
from jax.experimental.pallas import tpu as pltpu


def _largest_rect_kernel(y_ref, out_ref, *, seg_w, use_mask, unroll):
    """y_ref:  (H, B_TILE, W_pad) f32 rows — B_TILE images on sublanes, G images
               of width seg_w packed side-by-side along the W_pad lanes.
    out_ref: (B_TILE, W_pad) i32 per-lane best area (segmented max done on host)."""
    H, BT, W_pad = y_ref.shape

    # ---- hoisted loop-invariant constants ----
    if use_mask:
        lane = lax.broadcasted_iota(jnp.int32, (BT, W_pad), 1)
        # zero the value the roll brings into each segment-start lane
        seg_mask = (lane % seg_w != 0).astype(jnp.float32)
    zeros = jnp.zeros((BT, W_pad), jnp.float32)

    def row_body(i, carry):
        heights, best_vec = carry                 # both (BT, W_pad) f32
        row = y_ref[i]                            # (BT, W_pad), sublane/lane dense
        heights = jnp.where(row > 0.5, heights + 1.0, 0.0)

        # Largest rectangle in histogram via incremental window-min:
        #   after k+1 iterations m[j] = min(heights[j-k .. j]) (0 past segment
        #   start), so max over (j, width) of width*min equals the stack answer.
        def win_body(k, inner):
            m, hs, bv = inner
            width = lax.convert_element_type(k + 1, jnp.float32)   # scalar splat
            bv = jnp.maximum(bv, m * width)                        # defer lane-reduce
            hs = pltpu.roll(hs, shift=1, axis=1)                   # hs[j] <- hs[j-1]
            if use_mask:
                hs = hs * seg_mask
            m = jnp.minimum(m, hs)
            return (m, hs, bv)

        _, _, best_vec = lax.fori_loop(
            0, seg_w, win_body, (heights, heights, best_vec), unroll=unroll)
        return (heights, best_vec)

    _, best_vec = lax.fori_loop(0, H, row_body, (zeros, zeros))

    # Lane-dense store; the per-image (segmented) max happens on the host side.
    out_ref[...] = best_vec.astype(jnp.int32)


@functools.partial(jax.jit, static_argnames=("image_shape", "b_tile"))
def largest_rectangle_util(Y, image_shape=None, b_tile=32):
    """Pallas equivalent of LargestRectangleUtil.forward.  Y: (B, N) float."""
    B, N = Y.shape
    if image_shape is None:
        n = int(round(float(np.sqrt(N))))
        image_shape = (n, n)
    H, W = int(image_shape[0]), int(image_shape[1])
    # float32 height/area math is exact only while H*W < 2^24.
    assert H * W < (1 << 24), "image too large for f32-exact area accumulation"

    # ---- lane layout: pack G images of width W per 128-lane group if small ----
    if W <= 64:
        G = 128 // W
        W_pad = 128
    else:
        G = 1
        W_pad = max(128, pl.cdiv(W, 128) * 128)
    # Mask is required for packed layouts (interior segment boundaries) and when
    # real data fills all lanes (wrap brings real data into lane 0).
    use_mask = (G >= 2) or (W == W_pad)

    # ---- batch tile selection ----
    bt = max(8, (int(b_tile) // 8) * 8)
    # keep the double-buffered input slab under the default 32 MiB scoped VMEM
    vmem_budget = 24 << 20
    while bt > 8 and 2 * bt * H * W_pad * 4 > vmem_budget:
        bt -= 8
    # shrink for tiny batches (avoids padded-image work, and gives nb >= 2 for
    # v7x megacore whenever that is reachable)
    while bt > 8 and pl.cdiv(B, bt * G) < 2:
        bt -= 8

    imgs_per_step = bt * G
    nb = pl.cdiv(B, imgs_per_step)
    B_pad = nb * imgs_per_step

    # ---- host prep (fused inside this jit) ----
    Y_img = Y.reshape(B, H, W).astype(jnp.float32)
    if B_pad != B:
        Y_img = jnp.pad(Y_img, ((0, B_pad - B), (0, 0), (0, 0)))
    # (nb, bt, G, H, W) -> (nb, H, bt, G, W): batch on sublanes, packed images on lanes
    Y_img = Y_img.reshape(nb, bt, G, H, W).transpose(0, 3, 1, 2, 4).reshape(
        nb, H, bt, G * W)
    if G * W != W_pad:
        Y_img = jnp.pad(Y_img, ((0, 0), (0, 0), (0, 0), (0, W_pad - G * W)))

    unroll = W if W <= 32 else 8
    kernel = functools.partial(
        _largest_rect_kernel, seg_w=W, use_mask=use_mask, unroll=unroll)

    best = pl.pallas_call(
        kernel,
        out_shape=jax.ShapeDtypeStruct((nb * bt, W_pad), jnp.int32),
        grid_spec=pltpu.PrefetchScalarGridSpec(
            num_scalar_prefetch=0,
            grid=(nb,),
            in_specs=[
                pl.BlockSpec((None, H, bt, W_pad), lambda b: (b, 0, 0, 0)),
            ],
            out_specs=pl.BlockSpec((bt, W_pad), lambda b: (b, 0)),
        ),
        compiler_params=pltpu.CompilerParams(
            dimension_semantics=("parallel",)),
    )(Y_img)

    # Segmented per-image max over each image's own lanes (tiny, fused here).
    best = best.reshape(nb, bt, W_pad)[:, :, :G * W].reshape(nb, bt, G, W)
    areas = jnp.max(best, axis=-1).reshape(B_pad)[:B]
    return areas.reshape(B, 1)


# ------------------- pure-Python reference (ports the torch code) -----------
def _ref_max_rect_histogram(heights):
    stack = [-1]
    maxarea = 0
    for i in range(len(heights)):
        while stack[-1] != -1 and heights[stack[-1]] >= heights[i]:
            maxarea = max(maxarea, heights[stack.pop()] * (i - stack[-1] - 1))
        stack.append(i)
    while stack[-1] != -1:
        maxarea = max(maxarea, heights[stack.pop()] * (len(heights) - stack[-1] - 1))
    return maxarea


def _ref_maximal_rectangle(mat):
    if mat.sum() == 0:
        return 0
    maxarea = 0
    dp = [0] * mat.shape[1]
    for i in range(mat.shape[0]):
        for j in range(mat.shape[1]):
            dp[j] = dp[j] + 1 if mat[i, j] == 1 else 0
        maxarea = max(maxarea, _ref_max_rect_histogram(dp))
    return maxarea


def _check(Y, image_shape):
    out = jax.block_until_ready(largest_rectangle_util(Y, image_shape=image_shape))
    B = Y.shape[0]
    if image_shape is None:
        n = int(round(float(np.sqrt(Y.shape[1]))))
        image_shape = (n, n)
    H, W = int(image_shape[0]), int(image_shape[1])
    Y_np = np.asarray(Y)
    Y_bin = (Y_np > 0.5).astype(np.int32).reshape(B, H, W)
    ref = np.array([[_ref_maximal_rectangle(Y_bin[b])] for b in range(B)],
                   dtype=np.int32)
    assert out.shape == (B, 1), (out.shape, (B, 1))
    assert np.array_equal(np.asarray(out), ref), (np.asarray(out), ref)


if __name__ == "__main__":
    key = jax.random.PRNGKey(0)

    # Main case: 8 images of 16x16 (packed layout, 8 images per 128-lane group).
    k0, k1, k2 = jax.random.split(key, 3)
    Y0 = jax.random.uniform(k0, (8, 16 * 16), dtype=jnp.float32)
    _check(Y0, None)

    # Rectangular images, packed layout with G=4.
    Y1 = jax.random.uniform(k1, (3, 8 * 32), dtype=jnp.float32)
    _check(Y1, (8, 32))

    # Wide odd width: unpacked layout, zero-padded lanes, no roll mask needed.
    Y2 = jax.random.uniform(k2, (2, 4 * 129), dtype=jnp.float32)
    _check(Y2, (4, 129))

    print("KERNEL_OK")
</pallas_src>

<mosaic_0001>
module attributes {stable_mosaic.version = 11 : i64} {
  func.func @_largest_rect_kernel(%arg0: i32, %arg1: memref<1x16x8x128xf32, #tpu.memory_space<vmem>>, %arg2: memref<8x128xi32, #tpu.memory_space<vmem>>) attributes {dimension_semantics = [#tpu.dimension_semantics<parallel>], iteration_bounds = array<i64: 1>, scalar_prefetch = 0 : i64, scratch_operands = 0 : i64, tpu.core_type = #tpu.core_type<tc>, window_params = [{transform_indices = @transform_0, window_bounds = array<i64: 1, 16, 8, 128>}, {transform_indices = @transform_1, window_bounds = array<i64: 8, 128>}]} {
    %0 = tpu.iota {dimensions = array<i32: 1>} : vector<8x128xi32>
    %c16_i32 = arith.constant 16 : i32
    %c0_i32 = arith.constant 0 : i32
    %1 = arith.cmpi eq, %c16_i32, %c0_i32 : i32
    %c1_i32 = arith.constant 1 : i32
    %2 = arith.select %1, %c1_i32, %c16_i32 : i32
    %3 = vector.broadcast %2 : i32 to vector<8x128xi32>
    %4 = arith.remsi %0, %3 : vector<8x128xi32>
    %c0_i32_0 = arith.constant 0 : i32
    %5 = vector.broadcast %c0_i32_0 : i32 to vector<8x128xi32>
    %6 = arith.cmpi ne, %4, %5 : vector<8x128xi32>
    %c0_i32_1 = arith.constant 0 : i32
    %7 = vector.broadcast %c0_i32_1 : i32 to vector<8x128xi32>
    %8 = arith.cmpi slt, %4, %7 : vector<8x128xi32>
    %c0_i32_2 = arith.constant 0 : i32
    %9 = arith.cmpi slt, %2, %c0_i32_2 : i32
    %10 = vector.broadcast %9 : i1 to vector<8x128xi1>
    %11 = vector.broadcast %10 : vector<8x128xi1> to vector<8x128xi1>
    %12 = arith.xori %8, %11 : vector<8x128xi1>
    %13 = arith.andi %12, %6 : vector<8x128xi1>
    %14 = vector.broadcast %2 : i32 to vector<8x128xi32>
    %15 = arith.addi %4, %14 : vector<8x128xi32>
    %16 = arith.select %13, %15, %4 : vector<8x128xi1>, vector<8x128xi32>
    %c0_i32_3 = arith.constant 0 : i32
    %17 = vector.broadcast %c0_i32_3 : i32 to vector<8x128xi32>
    %18 = arith.cmpi ne, %16, %17 : vector<8x128xi32>
    %19 = arith.extui %18 : vector<8x128xi1> to vector<8x128xi32>
    %20 = arith.sitofp %19 : vector<8x128xi32> to vector<8x128xf32>
    %cst = arith.constant 0.000000e+00 : f32
    %21 = vector.broadcast %cst : f32 to vector<8x128xf32>
    %c0_i32_4 = arith.constant 0 : i32
    %c16_i32_5 = arith.constant 16 : i32
    %22 = arith.addi %c0_i32_4, %c16_i32_5 : i32
    %c1_i32_6 = arith.constant 1 : i32
    %23:2 = scf.for %arg3 = %c0_i32_4 to %22 step %c1_i32_6 iter_args(%arg4 = %21, %arg5 = %21) -> (vector<8x128xf32>, vector<8x128xf32>)  : i32 {
      %c0_9 = arith.constant 0 : index
      %26 = arith.index_cast %arg3 : i32 to index
      %c0_10 = arith.constant 0 : index
      %c0_11 = arith.constant 0 : index
      %27 = vector.load %arg1[%c0_9, %26, %c0_10, %c0_11] : memref<1x16x8x128xf32, #tpu.memory_space<vmem>>, vector<1x1x8x128xf32>
      %28 = vector.shape_cast %27 : vector<1x1x8x128xf32> to vector<8x128xf32>
      %cst_12 = arith.constant 5.000000e-01 : f32
      %29 = vector.broadcast %cst_12 : f32 to vector<8x128xf32>
      %30 = arith.cmpf ogt, %28, %29 : vector<8x128xf32>
      %cst_13 = arith.constant 1.000000e+00 : f32
      %31 = vector.broadcast %cst_13 : f32 to vector<8x128xf32>
      %32 = arith.addf %arg4, %31 : vector<8x128xf32>
      %cst_14 = arith.constant 0.000000e+00 : f32
      %33 = vector.broadcast %cst_14 : f32 to vector<8x128xf32>
      %34 = arith.select %30, %32, %33 : vector<8x128xi1>, vector<8x128xf32>
      %c0_i32_15 = arith.constant 0 : i32
      %c1_i32_16 = arith.constant 1 : i32
      %35 = arith.addi %c0_i32_15, %c1_i32_16 : i32
      %36 = arith.sitofp %35 : i32 to f32
      %37 = vector.broadcast %36 : f32 to vector<8x128xf32>
      %38 = arith.mulf %34, %37 : vector<8x128xf32>
      %39 = arith.maximumf %arg5, %38 : vector<8x128xf32>
      %c1_i32_17 = arith.constant 1 : i32
      %40 = tpu.dynamic_rotate %34 by %c1_i32_17 dim 1 : vector<8x128xf32>, i32 -> vector<8x128xf32>
      %41 = arith.mulf %40, %20 : vector<8x128xf32>
      %42 = arith.minimumf %34, %41 : vector<8x128xf32>
      %c1_i32_18 = arith.constant 1 : i32
      %c1_i32_19 = arith.constant 1 : i32
      %43 = arith.addi %c1_i32_18, %c1_i32_19 : i32
      %44 = arith.sitofp %43 : i32 to f32
      %45 = vector.broadcast %44 : f32 to vector<8x128xf32>
      %46 = arith.mulf %42, %45 : vector<8x128xf32>
      %47 = arith.maximumf %39, %46 : vector<8x128xf32>
      %c1_i32_20 = arith.constant 1 : i32
      %48 = tpu.dynamic_rotate %41 by %c1_i32_20 dim 1 : vector<8x128xf32>, i32 -> vector<8x128xf32>
      %49 = arith.mulf %48, %20 : vector<8x128xf32>
      %50 = arith.minimumf %42, %49 : vector<8x128xf32>
      %c2_i32 = arith.constant 2 : i32
      %c1_i32_21 = arith.constant 1 : i32
      %51 = arith.addi %c2_i32, %c1_i32_21 : i32
      %52 = arith.sitofp %51 : i32 to f32
      %53 = vector.broadcast %52 : f32 to vector<8x128xf32>
      %54 = arith.mulf %50, %53 : vector<8x128xf32>
      %55 = arith.maximumf %47, %54 : vector<8x128xf32>
      %c1_i32_22 = arith.constant 1 : i32
      %56 = tpu.dynamic_rotate %49 by %c1_i32_22 dim 1 : vector<8x128xf32>, i32 -> vector<8x128xf32>
      %57 = arith.mulf %56, %20 : vector<8x128xf32>
      %58 = arith.minimumf %50, %57 : vector<8x128xf32>
      %c3_i32 = arith.constant 3 : i32
      %c1_i32_23 = arith.constant 1 : i32
      %59 = arith.addi %c3_i32, %c1_i32_23 : i32
      %60 = arith.sitofp %59 : i32 to f32
      %61 = vector.broadcast %60 : f32 to vector<8x128xf32>
      %62 = arith.mulf %58, %61 : vector<8x128xf32>
      %63 = arith.maximumf %55, %62 : vector<8x128xf32>
      %c1_i32_24 = arith.constant 1 : i32
      %64 = tpu.dynamic_rotate %57 by %c1_i32_24 dim 1 : vector<8x128xf32>, i32 -> vector<8x128xf32>
      %65 = arith.mulf %64, %20 : vector<8x128xf32>
      %66 = arith.minimumf %58, %65 : vector<8x128xf32>
      %c4_i32 = arith.constant 4 : i32
      %c1_i32_25 = arith.constant 1 : i32
      %67 = arith.addi %c4_i32, %c1_i32_25 : i32
      %68 = arith.sitofp %67 : i32 to f32
      %69 = vector.broadcast %68 : f32 to vector<8x128xf32>
      %70 = arith.mulf %66, %69 : vector<8x128xf32>
      %71 = arith.maximumf %63, %70 : vector<8x128xf32>
      %c1_i32_26 = arith.constant 1 : i32
      %72 = tpu.dynamic_rotate %65 by %c1_i32_26 dim 1 : vector<8x128xf32>, i32 -> vector<8x128xf32>
      %73 = arith.mulf %72, %20 : vector<8x128xf32>
      %74 = arith.minimumf %66, %73 : vector<8x128xf32>
      %c5_i32 = arith.constant 5 : i32
      %c1_i32_27 = arith.constant 1 : i32
      %75 = arith.addi %c5_i32, %c1_i32_27 : i32
      %76 = arith.sitofp %75 : i32 to f32
      %77 = vector.broadcast %76 : f32 to vector<8x128xf32>
      %78 = arith.mulf %74, %77 : vector<8x128xf32>
      %79 = arith.maximumf %71, %78 : vector<8x128xf32>
      %c1_i32_28 = arith.constant 1 : i32
      %80 = tpu.dynamic_rotate %73 by %c1_i32_28 dim 1 : vector<8x128xf32>, i32 -> vector<8x128xf32>
      %81 = arith.mulf %80, %20 : vector<8x128xf32>
      %82 = arith.minimumf %74, %81 : vector<8x128xf32>
      %c6_i32 = arith.constant 6 : i32
      %c1_i32_29 = arith.constant 1 : i32
      %83 = arith.addi %c6_i32, %c1_i32_29 : i32
      %84 = arith.sitofp %83 : i32 to f32
      %85 = vector.broadcast %84 : f32 to vector<8x128xf32>
      %86 = arith.mulf %82, %85 : vector<8x128xf32>
      %87 = arith.maximumf %79, %86 : vector<8x128xf32>
      %c1_i32_30 = arith.constant 1 : i32
      %88 = tpu.dynamic_rotate %81 by %c1_i32_30 dim 1 : vector<8x128xf32>, i32 -> vector<8x128xf32>
      %89 = arith.mulf %88, %20 : vector<8x128xf32>
      %90 = arith.minimumf %82, %89 : vector<8x128xf32>
      %c7_i32 = arith.constant 7 : i32
      %c1_i32_31 = arith.constant 1 : i32
      %91 = arith.addi %c7_i32, %c1_i32_31 : i32
      %92 = arith.sitofp %91 : i32 to f32
      %93 = vector.broadcast %92 : f32 to vector<8x128xf32>
      %94 = arith.mulf %90, %93 : vector<8x128xf32>
      %95 = arith.maximumf %87, %94 : vector<8x128xf32>
      %c1_i32_32 = arith.constant 1 : i32
      %96 = tpu.dynamic_rotate %89 by %c1_i32_32 dim 1 : vector<8x128xf32>, i32 -> vector<8x128xf32>
      %97 = arith.mulf %96, %20 : vector<8x128xf32>
      %98 = arith.minimumf %90, %97 : vector<8x128xf32>
      %c8_i32 = arith.constant 8 : i32
      %c1_i32_33 = arith.constant 1 : i32
      %99 = arith.addi %c8_i32, %c1_i32_33 : i32
      %100 = arith.sitofp %99 : i32 to f32
      %101 = vector.broadcast %100 : f32 to vector<8x128xf32>
      %102 = arith.mulf %98, %101 : vector<8x128xf32>
      %103 = arith.maximumf %95, %102 : vector<8x128xf32>
      %c1_i32_34 = arith.constant 1 : i32
      %104 = tpu.dynamic_rotate %97 by %c1_i32_34 dim 1 : vector<8x128xf32>, i32 -> vector<8x128xf32>
      %105 = arith.mulf %104, %20 : vector<8x128xf32>
      %106 = arith.minimumf %98, %105 : vector<8x128xf32>
      %c9_i32 = arith.constant 9 : i32
      %c1_i32_35 = arith.constant 1 : i32
      %107 = arith.addi %c9_i32, %c1_i32_35 : i32
      %108 = arith.sitofp %107 : i32 to f32
      %109 = vector.broadcast %108 : f32 to vector<8x128xf32>
      %110 = arith.mulf %106, %109 : vector<8x128xf32>
      %111 = arith.maximumf %103, %110 : vector<8x128xf32>
      %c1_i32_36 = arith.constant 1 : i32
      %112 = tpu.dynamic_rotate %105 by %c1_i32_36 dim 1 : vector<8x128xf32>, i32 -> vector<8x128xf32>
      %113 = arith.mulf %112, %20 : vector<8x128xf32>
      %114 = arith.minimumf %106, %113 : vector<8x128xf32>
      %c10_i32 = arith.constant 10 : i32
      %c1_i32_37 = arith.constant 1 : i32
      %115 = arith.addi %c10_i32, %c1_i32_37 : i32
      %116 = arith.sitofp %115 : i32 to f32
      %117 = vector.broadcast %116 : f32 to vector<8x128xf32>
      %118 = arith.mulf %114, %117 : vector<8x128xf32>
      %119 = arith.maximumf %111, %118 : vector<8x128xf32>
      %c1_i32_38 = arith.constant 1 : i32
      %120 = tpu.dynamic_rotate %113 by %c1_i32_38 dim 1 : vector<8x128xf32>, i32 -> vector<8x128xf32>
      %121 = arith.mulf %120, %20 : vector<8x128xf32>
      %122 = arith.minimumf %114, %121 : vector<8x128xf32>
      %c11_i32 = arith.constant 11 : i32
      %c1_i32_39 = arith.constant 1 : i32
      %123 = arith.addi %c11_i32, %c1_i32_39 : i32
      %124 = arith.sitofp %123 : i32 to f32
      %125 = vector.broadcast %124 : f32 to vector<8x128xf32>
      %126 = arith.mulf %122, %125 : vector<8x128xf32>
      %127 = arith.maximumf %119, %126 : vector<8x128xf32>
      %c1_i32_40 = arith.constant 1 : i32
      %128 = tpu.dynamic_rotate %121 by %c1_i32_40 dim 1 : vector<8x128xf32>, i32 -> vector<8x128xf32>
      %129 = arith.mulf %128, %20 : vector<8x128xf32>
      %130 = arith.minimumf %122, %129 : vector<8x128xf32>
      %c12_i32 = arith.constant 12 : i32
      %c1_i32_41 = arith.constant 1 : i32
      %131 = arith.addi %c12_i32, %c1_i32_41 : i32
      %132 = arith.sitofp %131 : i32 to f32
      %133 = vector.broadcast %132 : f32 to vector<8x128xf32>
      %134 = arith.mulf %130, %133 : vector<8x128xf32>
      %135 = arith.maximumf %127, %134 : vector<8x128xf32>
      %c1_i32_42 = arith.constant 1 : i32
      %136 = tpu.dynamic_rotate %129 by %c1_i32_42 dim 1 : vector<8x128xf32>, i32 -> vector<8x128xf32>
      %137 = arith.mulf %136, %20 : vector<8x128xf32>
      %138 = arith.minimumf %130, %137 : vector<8x128xf32>
      %c13_i32 = arith.constant 13 : i32
      %c1_i32_43 = arith.constant 1 : i32
      %139 = arith.addi %c13_i32, %c1_i32_43 : i32
      %140 = arith.sitofp %139 : i32 to f32
      %141 = vector.broadcast %140 : f32 to vector<8x128xf32>
      %142 = arith.mulf %138, %141 : vector<8x128xf32>
      %143 = arith.maximumf %135, %142 : vector<8x128xf32>
      %c1_i32_44 = arith.constant 1 : i32
      %144 = tpu.dynamic_rotate %137 by %c1_i32_44 dim 1 : vector<8x128xf32>, i32 -> vector<8x128xf32>
      %145 = arith.mulf %144, %20 : vector<8x128xf32>
      %146 = arith.minimumf %138, %145 : vector<8x128xf32>
      %c14_i32 = arith.constant 14 : i32
      %c1_i32_45 = arith.constant 1 : i32
      %147 = arith.addi %c14_i32, %c1_i32_45 : i32
      %148 = arith.sitofp %147 : i32 to f32
      %149 = vector.broadcast %148 : f32 to vector<8x128xf32>
      %150 = arith.mulf %146, %149 : vector<8x128xf32>
      %151 = arith.maximumf %143, %150 : vector<8x128xf32>
      %c1_i32_46 = arith.constant 1 : i32
      %152 = tpu.dynamic_rotate %145 by %c1_i32_46 dim 1 : vector<8x128xf32>, i32 -> vector<8x128xf32>
      %153 = arith.mulf %152, %20 : vector<8x128xf32>
      %154 = arith.minimumf %146, %153 : vector<8x128xf32>
      %c15_i32 = arith.constant 15 : i32
      %c1_i32_47 = arith.constant 1 : i32
      %155 = arith.addi %c15_i32, %c1_i32_47 : i32
      %156 = arith.sitofp %155 : i32 to f32
      %157 = vector.broadcast %156 : f32 to vector<8x128xf32>
      %158 = arith.mulf %154, %157 : vector<8x128xf32>
      %159 = arith.maximumf %151, %158 : vector<8x128xf32>
      %c1_i32_48 = arith.constant 1 : i32
      %160 = tpu.dynamic_rotate %153 by %c1_i32_48 dim 1 : vector<8x128xf32>, i32 -> vector<8x128xf32>
      %161 = arith.mulf %160, %20 : vector<8x128xf32>
      %162 = arith.minimumf %154, %161 : vector<8x128xf32>
      %c16_i32_49 = arith.constant 16 : i32
      scf.yield %34, %159 : vector<8x128xf32>, vector<8x128xf32>
    }
    %c16_i32_7 = arith.constant 16 : i32
    %24 = arith.fptosi %23#1 : vector<8x128xf32> to vector<8x128xi32>
    %c0 = arith.constant 0 : index
    %c0_8 = arith.constant 0 : index
    %25 = vector.load %arg2[%c0, %c0_8] : memref<8x128xi32, #tpu.memory_space<vmem>>, vector<8x128xi32>
    tpu.vector_store %arg2[%c0, %c0_8], %24 {strides = array<i32>} : memref<8x128xi32, #tpu.memory_space<vmem>>, vector<8x128xi32>,
    return
  }
  func.func @transform_0(%arg0: i32) -> (i32, i32, i32, i32) {
    %c0_i32 = arith.constant 0 : i32
    %c0_i32_0 = arith.constant 0 : i32
    %c0_i32_1 = arith.constant 0 : i32
    %c0_i32_2 = arith.constant 0 : i32
    return %arg0, %c0_i32, %c0_i32_0, %c0_i32_1 : i32, i32, i32, i32
  }
  func.func @transform_1(%arg0: i32) -> (i32, i32) {
    %c0_i32 = arith.constant 0 : i32
    %c0_i32_0 = arith.constant 0 : i32
    return %arg0, %c0_i32 : i32, i32
  }
}

</mosaic_0001>

<bundles_post_ra>
// kernel: largest_rectangle_util.1
= control target key start
LH: loop header
LB: loop body
LE: loop exit
PB: predicated region body
PF: predicated region fallthrough
CT: control target
= control target key end

     0   :  { %v8_v0 = vlaneseq  ;;  %v203_v3 = vmov 0.0   ;;  %v217_v5 = vmov 0.0   ;;  %v219_v6 = vmov 0.0   ;;  %s221_s6 = smov 0   ;;  %s278_s0 = inlined_call_operand.vmem [shape: f32[1,16,8,128], index: 0, kind: input, shape index: {}]   ;;  %s279_s1 = inlined_call_operand.vmem [shape: s32[8,128], index: 1, kind: output, shape index: {}]  }
   0x2   :  { %v9_v1 = vand.u32 127, %v8_v0 }
   0x4   :  { %v14_v2 = vand.u32 15, %v9_v1 }
   0x6   :  { %vm22_vm0 = vcmp.ne.s32.totalorder %v14_v2, 0 }
   0x7   :  { %v215_v4 = vsel %vm22_vm0, 1.0, %v203_v3 }
   0x8 LB: > { %s150_s7 = sshll.u32 %s201_s6, 3  ;;  %v37_v7 = vadd.f32 1.0, %v197_v6  ;;  %s204_s11 = smov 1   ;;  %s201_s6 = sphi %s221_s6, %s30_s6   ;;  %v197_v6 = vphi %v219_v6, %v232_v6   ;;  %v193_v5 = vphi %v217_v5, %v280_v5  }
   0x9   : > { %s34_s10 = scalar_lea.vmem %s278_s0, %s150_s7  ;;  %s30_s6 = sadd.s32 1, %s201_s6  }
   0xa   : > { %v35_v8 = vld [vmem:[%s34_s10] sm:$0xff]  ;;  %p27_p0 = scmp.ge.s32.totalorder %s30_s6, 16  }
   0xb   : > { %vm36_vm1 = vcmp.gt.f32.partialorder %v35_v8, 0.5 }
   0xc   : > { %v232_v6 = vsel %vm36_vm1, %v37_v7, 0.0  }
   0xd   : > { %40 = vrot.lane.b32.xlu0 %v232_v6, %s204_s11  ;;  %v39_v13 = vmax.f32 %v193_v5, %v232_v6 }
  0x7f   : > { %v41_v9 = vpop.permute.xlu0 %40 }
  0x80   : > { %v42_v10 = vmul.f32 %v215_v4, %v41_v9 }
  0x82   : > { %46 = vrot.lane.b32.xlu0 %v42_v10, %s204_s11  ;;  %v43_v11 = vmin.f32 %v232_v6, %v42_v10 }
  0x84   : > { %v44_v14 = vmul.f32 2.0, %v43_v11 }
  0x86   : > { %v45_v17 = vmax.f32 %v39_v13, %v44_v14 }
  0xf4   : > { %v47_v12 = vpop.permute.xlu0 %46 }
  0xf5   : > { %v48_v15 = vmul.f32 %v215_v4, %v47_v12 }
  0xf7   : > { %v49_v16 = vmin.f32 %v43_v11, %v48_v15  ;;  %52 = vrot.lane.b32.xlu1 %v48_v15, %s204_s11 }
  0xf9   : > { %v50_v18 = vmul.f32 3.0, %v49_v16 }
  0xfb   : > { %v51_v19 = vmax.f32 %v45_v17, %v50_v18 }
 0x169   : > { %v53_v20 = vpop.permute.xlu1 %52 }
 0x16a   : > { %v54_v21 = vmul.f32 %v215_v4, %v53_v20 }
 0x16c   : > { %v55_v22 = vmin.f32 %v49_v16, %v54_v21  ;;  %58 = vrot.lane.b32.xlu1 %v54_v21, %s204_s11 }
 0x16e   : > { %v56_v23 = vmul.f32 4.0, %v55_v22 }
 0x170   : > { %v57_v24 = vmax.f32 %v51_v19, %v56_v23 }
 0x1de   : > { %v59_v25 = vpop.permute.xlu1 %58 }
 0x1df   : > { %v60_v26 = vmul.f32 %v215_v4, %v59_v25 }
 0x1e1   : > { %v61_v27 = vmin.f32 %v55_v22, %v60_v26  ;;  %64 = vrot.lane.b32.xlu0 %v60_v26, %s204_s11 }
 0x1e3   : > { %v62_v28 = vmul.f32 5.0, %v61_v27 }
 0x1e5   : > { %v63_v29 = vmax.f32 %v57_v24, %v62_v28 }
 0x253   : > { %v65_v30 = vpop.permute.xlu0 %64 }
 0x254   : > { %v66_v31 = vmul.f32 %v215_v4, %v65_v30 }
 0x256   : > { %v67_v32 = vmin.f32 %v61_v27, %v66_v31  ;;  %70 = vrot.lane.b32.xlu1 %v66_v31, %s204_s11 }
 0x258   : > { %v68_v33 = vmul.f32 6.0, %v67_v32 }
 0x25a   : > { %v69_v34 = vmax.f32 %v63_v29, %v68_v33 }
 0x2c8   : > { %v71_v35 = vpop.permute.xlu1 %70 }
 0x2c9   : > { %v72_v36 = vmul.f32 %v215_v4, %v71_v35 }
 0x2cb   : > { %v73_v37 = vmin.f32 %v67_v32, %v72_v36  ;;  %76 = vrot.lane.b32.xlu0 %v72_v36, %s204_s11 }
 0x2cd   : > { %v74_v38 = vmul.f32 7.0, %v73_v37 }
 0x2cf   : > { %v75_v39 = vmax.f32 %v69_v34, %v74_v38 }
 0x33d   : > { %v77_v40 = vpop.permute.xlu0 %76 }
 0x33e   : > { %v78_v41 = vmul.f32 %v215_v4, %v77_v40 }
 0x340   : > { %v79_v42 = vmin.f32 %v73_v37, %v78_v41  ;;  %82 = vrot.lane.b32.xlu1 %v78_v41, %s204_s11 }
 0x342   : > { %v80_v43 = vmul.f32 8.0, %v79_v42 }
 0x344   : > { %v81_v44 = vmax.f32 %v75_v39, %v80_v43 }
 0x3b2   : > { %v83_v45 = vpop.permute.xlu1 %82 }
 0x3b3   : > { %v84_v46 = vmul.f32 %v215_v4, %v83_v45 }
 0x3b5   : > { %v85_v47 = vmin.f32 %v79_v42, %v84_v46  ;;  %88 = vrot.lane.b32.xlu0 %v84_v46, %s204_s11 }
 0x3b7   : > { %v86_v48 = vmul.f32 9.0, %v85_v47 }
 0x3b9   : > { %v87_v49 = vmax.f32 %v81_v44, %v86_v48 }
 0x427   : > { %v89_v50 = vpop.permute.xlu0 %88 }
 0x428   : > { %v90_v51 = vmul.f32 %v215_v4, %v89_v50 }
 0x42a   : > { %v91_v52 = vmin.f32 %v85_v47, %v90_v51  ;;  %94 = vrot.lane.b32.xlu1 %v90_v51, %s204_s11 }
 0x42c   : > { %v92_v53 = vmul.f32 10.0, %v91_v52 }
 0x42e   : > { %v93_v54 = vmax.f32 %v87_v49, %v92_v53 }
 0x49c   : > { %v95_v55 = vpop.permute.xlu1 %94 }
 0x49d   : > { %v96_v56 = vmul.f32 %v215_v4, %v95_v55 }
 0x49f   : > { %v97_v57 = vmin.f32 %v91_v52, %v96_v56  ;;  %100 = vrot.lane.b32.xlu0 %v96_v56, %s204_s11 }
 0x4a1   : > { %v98_v58 = vmul.f32 11.0, %v97_v57 }
 0x4a3   : > { %v99_v59 = vmax.f32 %v93_v54, %v98_v58 }
 0x511   : > { %v101_v60 = vpop.permute.xlu0 %100 }
 0x512   : > { %v102_v61 = vmul.f32 %v215_v4, %v101_v60 }
 0x514   : > { %v103_v62 = vmin.f32 %v97_v57, %v102_v61  ;;  %106 = vrot.lane.b32.xlu1 %v102_v61, %s204_s11 }
 0x516   : > { %v104_v63 = vmul.f32 12.0, %v103_v62 }
 0x518   : > { %v105_v0 = vmax.f32 %v99_v59, %v104_v63 }
 0x586   : > { %v107_v1 = vpop.permute.xlu1 %106 }
 0x587   : > { %v108_v2 = vmul.f32 %v215_v4, %v107_v1 }
 0x589   : > { %v109_v3 = vmin.f32 %v103_v62, %v108_v2  ;;  %112 = vrot.lane.b32.xlu0 %v108_v2, %s204_s11 }
 0x58b   : > { %v110_v5 = vmul.f32 13.0, %v109_v3 }
 0x58d   : > { %v111_v7 = vmax.f32 %v105_v0, %v110_v5 }
 0x5fb   : > { %v113_v8 = vpop.permute.xlu0 %112 }
 0x5fc   : > { %v114_v9 = vmul.f32 %v215_v4, %v113_v8 }
 0x5fe   : > { %v115_v10 = vmin.f32 %v109_v3, %v114_v9  ;;  %118 = vrot.lane.b32.xlu1 %v114_v9, %s204_s11 }
 0x600   : > { %v116_v11 = vmul.f32 14.0, %v115_v10 }
 0x602   : > { %v117_v12 = vmax.f32 %v111_v7, %v116_v11 }
 0x670   : > { %v119_v13 = vpop.permute.xlu1 %118 }
 0x671   : > { %v120_v14 = vmul.f32 %v215_v4, %v119_v13 }
 0x673   : > { %v121_v15 = vmin.f32 %v115_v10, %v120_v14  ;;  %124 = vrot.lane.b32.xlu0 %v120_v14, %s204_s11 }
 0x675   : > { %v122_v16 = vmul.f32 15.0, %v121_v15 }
 0x677   : > { %v123_v17 = vmax.f32 %v117_v12, %v122_v16 }
 0x6e5   : > { %v125_v18 = vpop.permute.xlu0 %124 }
 0x6e6   : > { %v126_v19 = vmul.f32 %v215_v4, %v125_v18 }
 0x6e8   : > { %v127_v20 = vmin.f32 %v121_v15, %v126_v19 }
 0x6ea   : > { %v128_v21 = vmul.f32 16.0, %v127_v20  ;;  %29 = sbr.rel (!%p27_p0) target bundleno = 8 (0x8), region = 32 }
 0x6ec   : > { %v129_v22 = vmax.f32 %v123_v17, %v128_v21  }
 0x6ee   : > { %v280_v5 = vmov %v129_v22  ;;  %v151_v23 = vtrunc.f32 (%p27_p0), %v129_v22 }
 0x6f0   :  { %v152_v24 = vcvt.f32.s32 %v151_v23 }
 0x6f2   :  { %131 = vst [vmem:[%s279_s1] sm:$0xff] %v152_v24 }

</bundles_post_ra>
